<compile_context>
chip_gen: v7x
topology: tpu7x:2x2x1
jax: 0.10.0
libtpu: 0.0.40
codegen_flags: <defaults>
</compile_context>

<pallas_src>
import jax
import jax.numpy as jnp
from jax.experimental import pallas as pl
from jax.experimental.pallas import tpu as pltpu


# --------------------------------------------------------------------------
# Kernel body
# --------------------------------------------------------------------------
def _normalize_kernel(x_ref, params_ref, o_ref):
    # x_ref / o_ref : (R, CW) lane-dense tiles in VMEM.
    # params_ref    : (R, 2) f32 -> column 0 = scale (1/std), column 1 = bias (-mean/std).
    x = x_ref[...].astype(jnp.float32)
    scale = params_ref[:, 0:1]          # (R, 1) f32, broadcasts over lanes
    bias = params_ref[:, 1:2]           # (R, 1) f32
    o_ref[...] = (x * scale + bias).astype(o_ref.dtype)


# --------------------------------------------------------------------------
# Tiling helpers
# --------------------------------------------------------------------------
def _vmem_budget():
    """Per-generation (block_bytes, vmem_limit_bytes) derived from physical VMEM."""
    phys = 64 * 1024 * 1024  # conservative fallback (v7x-sized) if query fails
    try:
        phys = int(pltpu.get_tpu_info().vmem_capacity_bytes)
    except Exception:
        pass
    # Keep 4 x block (x + out, double-buffered) well inside the scoped limit.
    block = max(2 * 1024 * 1024, min(8 * 1024 * 1024, phys // 16))
    limit = int(min(64 * 1024 * 1024, max(32 * 1024 * 1024, phys // 2)))
    limit = min(limit, phys)
    return block, limit


def _choose_block(rows, cols, itemsize, target_bytes):
    """Pick an (R, CW) block that is (8,128)-friendly and <= target_bytes."""
    if rows * cols * itemsize <= target_bytes:
        return rows, cols                       # whole tensor in one block
    row_bytes = cols * itemsize
    rows_fit = target_bytes // max(1, row_bytes)
    if rows_fit >= 8:
        # Full-width rows, a multiple of 8 of them, never above the budget.
        r = min(rows, (rows_fit // 8) * 8)
        return r, cols
    # A handful of full rows already blows the budget: tile along the lane axis.
    r = min(rows, 8)
    lanes_fit = max(1, target_bytes // (r * itemsize * 128))
    cw = min(cols, lanes_fit * 128)
    return r, cw


def _ensure_multi_block(r, cw, rows, cols, itemsize, min_traffic_bytes=1 << 20):
    """Guarantee >=2 blocks on some parallel axis for non-tiny tensors (v7x, 2 TCs)."""
    if rows * cols * itemsize <= min_traffic_bytes:
        return r, cw                            # tiny: single block is fine
    if r < rows or cw < cols:
        return r, cw                            # already multi-block
    if rows >= 16:
        return max(8, (rows // 2 // 8) * 8), cw
    if cols >= 256:
        return r, max(128, (cols // 2 // 128) * 128)
    return r, cw


# --------------------------------------------------------------------------
# Wrapper
# --------------------------------------------------------------------------
def normalize(x, mean, std, *, target_block_bytes=None, donate=False):
    """(x - mean.reshape(1,3,1,1)) / std.reshape(1,3,1,1) in NCHW layout."""
    assert x.ndim == 4, "Normalize expects an NCHW tensor"
    assert jnp.issubdtype(x.dtype, jnp.floating), (
        "Normalize only accepts floating-point inputs (got %s)" % x.dtype)

    N, C, H, W = x.shape
    HW = H * W
    itemsize = jnp.dtype(x.dtype).itemsize

    block_budget, vmem_limit = _vmem_budget()
    if target_block_bytes is not None:
        block_budget = int(target_block_bytes)

    # Per-channel affine params in f32 (mirrors PyTorch's f32 buffers).
    mean32 = jnp.asarray(mean, jnp.float32).reshape(-1)
    std32 = jnp.asarray(std, jnp.float32).reshape(-1)
    scale = 1.0 / std32                 # (C,)
    bias = -mean32 / std32              # (C,)

    # Layout: prefer a lane dimension that is a multiple of 128.
    if HW % 128 == 0 or W % 128 != 0:
        rows, cols = N * C, HW
        x2 = x.reshape(rows, cols)
        # row order n*C + c -> channel cycles fastest
        scale_rows = jnp.tile(scale, N)                     # (N*C,)
        bias_rows = jnp.tile(bias, N)                       # (N*C,)
    else:
        # HW ragged but W is lane-aligned: use (N*C*H, W) rows instead.
        rows, cols = N * C * H, W
        x2 = x.reshape(rows, cols)
        scale_rows = jnp.repeat(jnp.tile(scale, N), H)      # (N*C*H,)
        bias_rows = jnp.repeat(jnp.tile(bias, N), H)        # (N*C*H,)

    # Pack scale & bias into a single small side input: (rows, 2) f32.
    params = jnp.stack([scale_rows, bias_rows], axis=1)

    r, cw = _choose_block(rows, cols, itemsize, block_budget)
    r, cw = _ensure_multi_block(r, cw, rows, cols, itemsize)
    grid = (pl.cdiv(rows, r), pl.cdiv(cols, cw))

    total = rows * cols
    cost = pl.CostEstimate(
        flops=2 * total,                       # one mul + one add per element
        transcendentals=0,
        bytes_accessed=2 * total * itemsize,   # read x + write out
    )

    kwargs = {}
    if donate:
        kwargs["input_output_aliases"] = {0: 0}   # x2 aliased to the output

    out2 = pl.pallas_call(
        _normalize_kernel,
        out_shape=jax.ShapeDtypeStruct((rows, cols), x.dtype),
        grid_spec=pltpu.PrefetchScalarGridSpec(
            num_scalar_prefetch=0,
            grid=grid,
            in_specs=[
                pl.BlockSpec((r, cw), lambda i, j: (i, j)),   # x tile
                pl.BlockSpec((r, 2), lambda i, j: (i, 0)),    # packed scale/bias
            ],
            out_specs=pl.BlockSpec((r, cw), lambda i, j: (i, j)),
        ),
        compiler_params=pltpu.CompilerParams(
            dimension_semantics=("parallel", "parallel"),
            vmem_limit_bytes=vmem_limit,
        ),
        cost_estimate=cost,
        **kwargs,
    )(x2, params)

    return out2.reshape(N, C, H, W)


# --------------------------------------------------------------------------
# Self-test
# --------------------------------------------------------------------------
if __name__ == "__main__":
    key = jax.random.PRNGKey(0)
    N, C, H, W = 2, 3, 16, 16  # Normalize is hard-coded to 3 channels
    x = jax.random.uniform(key, (N, C, H, W), dtype=jnp.float32)

    # Deterministic "ImageNet-like" buffers (as they would be registered).
    mean = jnp.array([0.485, 0.456, 0.406], dtype=jnp.float32)
    std = jnp.array([0.229, 0.224, 0.225], dtype=jnp.float32)

    out = normalize(x, mean, std)
    jax.block_until_ready(out)

    # Reference check (plain JAX, same semantics as the PyTorch forward).
    ref = (x - mean.reshape(1, 3, 1, 1)) / std.reshape(1, 3, 1, 1)
    assert out.shape == ref.shape and out.dtype == ref.dtype
    assert jnp.allclose(out, ref, atol=1e-5, rtol=1e-5)

    # Also exercise a larger, multi-block path (224x224 -> lane-dense, grid>1).
    x_big = jax.random.uniform(jax.random.PRNGKey(1), (4, 3, 224, 224), jnp.float32)
    out_big = normalize(x_big, mean, std)
    jax.block_until_ready(out_big)
    ref_big = (x_big - mean.reshape(1, 3, 1, 1)) / std.reshape(1, 3, 1, 1)
    assert jnp.allclose(out_big, ref_big, atol=1e-5, rtol=1e-5)

    print("KERNEL_OK")
</pallas_src>

<mosaic_0001>
module attributes {stable_mosaic.version = 11 : i64} {
  func.func @_normalize_kernel(%arg0: i32, %arg1: i32, %arg2: memref<6x256xf32, #tpu.memory_space<vmem>>, %arg3: memref<6x2xf32, #tpu.memory_space<vmem>>, %arg4: memref<6x256xf32, #tpu.memory_space<vmem>>) attributes {dimension_semantics = [#tpu.dimension_semantics<parallel>, #tpu.dimension_semantics<parallel>], iteration_bounds = array<i64: 1, 1>, scalar_prefetch = 0 : i64, scratch_operands = 0 : i64, tpu.core_type = #tpu.core_type<tc>, window_params = [{transform_indices = @transform_0, window_bounds = array<i64: 6, 256>}, {transform_indices = @transform_1, window_bounds = array<i64: 6, 2>}, {transform_indices = @transform_2, window_bounds = array<i64: 6, 256>}]} {
    %c0 = arith.constant 0 : index
    %c0_0 = arith.constant 0 : index
    %0 = vector.load %arg2[%c0, %c0_0] : memref<6x256xf32, #tpu.memory_space<vmem>>, vector<6x256xf32>
    %c0_1 = arith.constant 0 : index
    %c0_2 = arith.constant 0 : index
    %1 = vector.load %arg3[%c0_1, %c0_2] : memref<6x2xf32, #tpu.memory_space<vmem>>, vector<6x1xf32>
    %c0_3 = arith.constant 0 : index
    %c1 = arith.constant 1 : index
    %2 = vector.load %arg3[%c0_3, %c1] : memref<6x2xf32, #tpu.memory_space<vmem>>, vector<6x1xf32>
    %3 = vector.broadcast %1 : vector<6x1xf32> to vector<6x256xf32>
    %4 = arith.mulf %0, %3 : vector<6x256xf32>
    %5 = vector.broadcast %2 : vector<6x1xf32> to vector<6x256xf32>
    %6 = arith.addf %4, %5 : vector<6x256xf32>
    %c0_4 = arith.constant 0 : index
    %c0_5 = arith.constant 0 : index
    %7 = vector.load %arg4[%c0_4, %c0_5] : memref<6x256xf32, #tpu.memory_space<vmem>>, vector<6x256xf32>
    tpu.vector_store %arg4[%c0_4, %c0_5], %6 {strides = array<i32>} : memref<6x256xf32, #tpu.memory_space<vmem>>, vector<6x256xf32>,
    return
  }
  func.func @transform_0(%arg0: i32, %arg1: i32) -> (i32, i32) {
    %c0_i32 = arith.constant 0 : i32
    return %arg0, %arg1 : i32, i32
  }
  func.func @transform_1(%arg0: i32, %arg1: i32) -> (i32, i32) {
    %c0_i32 = arith.constant 0 : i32
    %c0_i32_0 = arith.constant 0 : i32
    return %arg0, %c0_i32 : i32, i32
  }
  func.func @transform_2(%arg0: i32, %arg1: i32) -> (i32, i32) {
    %c0_i32 = arith.constant 0 : i32
    return %arg0, %arg1 : i32, i32
  }
}

</mosaic_0001>

<bundles_post_ra>
// kernel: tpu_custom_call.1
= control target key start
LH: loop header
LB: loop body
LE: loop exit
PB: predicated region body
PF: predicated region fallthrough
CT: control target
= control target key end

     0   :  { %7 = vsyncpa [#allocation3], 0  ;;  %s157_s0 = inlined_call_operand.hbm [shape: f32[6,256], index: 0, kind: input, shape index: {}]   ;;  %s158_s1 = inlined_call_operand.vmem [shape: f32[6,2], index: 1, kind: input, shape index: {}]   ;;  %s159_s2 = inlined_call_operand.hbm [shape: f32[6,256], index: 2, kind: output, shape index: {}]  }
   0x1   :  { %8 = vsyncpa [#allocation4], 0  ;;  %s111_s9 = smov [#allocation2]   ;;  %s63_s13 = scalar_lea.hbm %s157_s0, 256 }
   0x2   :  { %s15_s10 = sshll.u32 %s111_s9, 4  ;;  %p64_p0 = scmp.ne.s32.totalorder %s157_s0, %s63_s13  ;;  %s16_s10 = int_to_ptr.vmem [resolvable:$true] %s15_s10 }
   0x3   :  { %p67_p1 = scmp.lt.u32.totalorder %s63_s13, %s157_s0 }
   0x5   :  { %p69_p2 = pnand %p67_p1, %p64_p0 }
   0x7   :  { %72 = shalt.err (!%p69_p2)
}
   0x8   :  { %s73_s18 = scalar_lea.vmem %s16_s10, 256  ;;  %p78_p4 = scmp.lt.s32.totalorder %s16_s10, %s16_s10 }
   0x9   :  { %p74_p3 = scmp.ne.s32.totalorder %s16_s10, %s73_s18  ;;  %p79_p5 = scmp.lt.s32.totalorder %s73_s18, %s73_s18 }
   0xb   :  { %p80_p6 = por %p79_p5, %p78_p4 }
   0xd   :  { %p81_p7 = pnand %p80_p6, %p74_p3 }
   0xf   :  { %84 = shalt.err (!%p81_p7)
}
  0x10   :  { %18 = dma.hbm_to_vmem [thread:$0]  %s157_s0, 256, %s16_s10, [#allocation3]  }
  0x11   :  { %107 = dma.done.wait [#allocation3], 256  }
  0x12   :  { %108 = vsyncadd [#allocation3], 4294967040  ;;  %v112_v0 = vmov 0   ;;  %v26_v1 = vld [vmem:[%s158_s1] sm:$0x3f]  ;;  %v113_v2 = vmov 1  }
  0x13   :  { %61 = vset.pattern.permute.xlu0 %v112_v0  ;;  %v24_v4 = vld [vmem:[#allocation2] sm:$0x3f]  ;;  %v25_v5 = vld [vmem:[#allocation2 + $0x8] sm:$0x3f]  ;;  %s114_s23 = smov [#allocation5]  }
  0x14   :  { %29 = vperm.xlu0 %61, %v26_v1   ;;  %s48_s24 = sshll.u32 %s114_s23, 4  ;;  %s49_s24 = int_to_ptr.vmem [resolvable:$true] %s48_s24 }
  0x15   :  { %s85_s0 = scalar_lea.vmem %s49_s24, 256  ;;  %p90_p9 = scmp.lt.s32.totalorder %s49_s24, %s49_s24 }
  0x16   :  { %p86_p8 = scmp.ne.s32.totalorder %s49_s24, %s85_s0  ;;  %p91_p10 = scmp.lt.s32.totalorder %s85_s0, %s85_s0 }
  0x18   :  { %62 = vset.pattern.permute.xlu0 %v113_v2  ;;  %p92_p11 = por %p91_p10, %p90_p9 }
  0x19   :  { %35 = vperm.xlu0 %62, %v26_v1  }
  0x1a   :  { %p93_p12 = pnand %p92_p11, %p86_p8 }
  0x93   :  { %v30_v3 = vpop.permute.xlu0 %29 }
  0x94   :  { %v32_v6 = vmul.f32 %v30_v3, %v24_v4  ;;  %v33_v7 = vmul.f32 %v30_v3, %v25_v5 }
  0x98   :  { %v36_v8 = vpop.permute.xlu0 %35 }
  0x99   :  { %v38_v9 = vadd.f32 %v36_v8, %v32_v6  ;;  %v39_v10 = vadd.f32 %v36_v8, %v33_v7 }
  0x9b   :  { %40 = vst [vmem:[#allocation5] sm:$0x3f] %v38_v9  ;;  %41 = vst [vmem:[#allocation5 + $0x8] sm:$0x3f] %v39_v10 }
  0x9c   :  { %96 = shalt.err (!%p93_p12)
}
  0x9d   :  { %s97_s26 = scalar_lea.hbm %s159_s2, 256 }
  0x9e   :  { %p98_p13 = scmp.ne.s32.totalorder %s159_s2, %s97_s26  ;;  %p101_p0 = scmp.lt.u32.totalorder %s97_s26, %s159_s2 }
  0xa0   :  { %p103_p1 = pnand %p101_p0, %p98_p13 }
  0xa2   :  { %106 = shalt.err (!%p103_p1)
}
  0xa3   :  { %51 = dma.vmem_to_hbm [thread:$0]  %s49_s24, 256, %s159_s2, [#allocation4]  }
  0xa4   :  { %109 = dma.done.wait [#allocation4], 256  }
  0xa5   :  { %110 = vsyncadd [#allocation4], 4294967040 }
  0xa6   :  { %55 = vsyncpa [#allocation3], 1 }
  0xa7   :  { %56 = vsyncpa [#allocation4], 1 }

</bundles_post_ra>
